<compile_context>
chip_gen: v5e
topology: v5e:2x2
jax: 0.10.0
libtpu: 0.0.40
codegen_flags: <defaults>
</compile_context>

<pallas_src>
import functools

import jax
import jax.numpy as jnp
from jax.experimental import pallas as pl
from jax.experimental.pallas import tpu as pltpu

LANE = 128     # f32 lane width
SUBLANE = 8    # f32 sublane width


def _round_up(x, m):
    return (x + m - 1) // m * m


def _mlp_kernel(*refs, num_layers, neg_slope, matmul_dtype):
    # refs = x, w0, b0, w1, b1, ..., w_{L-1}, b_{L-1}, o, h_scratch
    x_ref = refs[0]
    w_refs = refs[1:1 + 2 * num_layers:2]
    b_refs = refs[2:2 + 2 * num_layers:2]
    o_ref = refs[1 + 2 * num_layers]
    h_ref = refs[2 + 2 * num_layers]

    h = x_ref[...]
    for i in range(num_layers):
        lhs = h if matmul_dtype is None else h.astype(matmul_dtype)
        rhs = w_refs[i][...]
        if matmul_dtype is not None:
            rhs = rhs.astype(matmul_dtype)
        y = jnp.dot(lhs, rhs, preferred_element_type=jnp.float32)
        y = y + b_refs[i][...]
        if i < num_layers - 1:
            # PyTorch nn.LeakyReLU default negative_slope = 0.01
            y = jnp.where(y >= 0.0, y, neg_slope * y)
            w_out = y.shape[1]                 # static, lane-aligned
            h_ref[:, :w_out] = y               # keep activation VMEM-resident
            h = h_ref[:, :w_out]
        else:
            # sigmoid: exp on EUP + approx reciprocal on EUP (off the VALU)
            y = pl.reciprocal(1.0 + jnp.exp(-y), approx=True)
            o_ref[...] = y.astype(o_ref.dtype)


def net_forward(features, params, *, block_batch=512, matmul_dtype=None):
    """Fused forward pass of Net (dropout = identity / eval mode).

    features: (batch, in_feats) float32
    params:   list of (w, b) with w of shape (in, out) (transposed vs PyTorch)
    """
    batch, in_f = features.shape
    num_layers = len(params)
    n_classes = params[-1][0].shape[1]

    # Lane-pad every feature dim to a multiple of 128.
    dims = [in_f] + [w.shape[1] for (w, _) in params]
    pdims = [_round_up(d, LANE) for d in dims]

    # Batch tiling: TM multiple of 8, capped so tiles stay small in VMEM
    # (512 rows * 128 lanes * 4 B ~= 256 KiB per buffer -> fine even under
    # v7x's 64 MiB VMEM / 32 MiB scoped default, with double buffering).
    tm = min(block_batch, _round_up(batch, SUBLANE))
    batch_p = _round_up(batch, tm)
    grid = (batch_p // tm,)

    x_p = jnp.zeros((batch_p, pdims[0]), features.dtype)
    x_p = x_p.at[:batch, :in_f].set(features)

    padded_params = []
    for i, (w, b) in enumerate(params):
        wp = jnp.zeros((pdims[i], pdims[i + 1]), w.dtype)
        wp = wp.at[:w.shape[0], :w.shape[1]].set(w)
        bp = jnp.zeros((1, pdims[i + 1]), b.dtype)
        bp = bp.at[0, :b.shape[0]].set(b)
        padded_params += [wp, bp]

    in_specs = [pl.BlockSpec((tm, pdims[0]), lambda i: (i, 0))]
    for li in range(num_layers):
        in_specs.append(pl.BlockSpec((pdims[li], pdims[li + 1]), lambda i: (0, 0)))
        in_specs.append(pl.BlockSpec((1, pdims[li + 1]), lambda i: (0, 0)))
    out_specs = pl.BlockSpec((tm, pdims[-1]), lambda i: (i, 0))

    scratch_width = max(pdims[1:])
    scratch_shapes = [pltpu.VMEM((tm, scratch_width), jnp.float32)]

    flops = 2 * batch_p * sum(pdims[li] * pdims[li + 1] for li in range(num_layers))
    bytes_accessed = 4 * (batch_p * pdims[0] + batch_p * pdims[-1]
                          + sum(pdims[li] * pdims[li + 1] + pdims[li + 1]
                                for li in range(num_layers)))
    cost = pl.CostEstimate(flops=flops,
                           transcendentals=batch_p * pdims[-1],
                           bytes_accessed=bytes_accessed)

    kernel = functools.partial(_mlp_kernel,
                               num_layers=num_layers,
                               neg_slope=0.01,
                               matmul_dtype=matmul_dtype)

    out_p = pl.pallas_call(
        kernel,
        out_shape=jax.ShapeDtypeStruct((batch_p, pdims[-1]), features.dtype),
        grid=grid,
        in_specs=in_specs,
        out_specs=out_specs,
        scratch_shapes=scratch_shapes,
        compiler_params=pltpu.CompilerParams(
            dimension_semantics=("parallel",)),
        cost_estimate=cost,
    )(x_p, *padded_params)

    return out_p[:batch, :n_classes]


def init_params(key, in_feats, n_hidden, n_classes, n_layers):
    """Deterministic parameter init mirroring the PyTorch module's shapes.

    Layers: Linear(in_feats, n_hidden), (n_layers-2) x Linear(n_hidden, n_hidden),
    Linear(n_hidden, n_classes). Weights stored as (in, out)."""
    dims = [in_feats] + [n_hidden] * (n_layers - 1) + [n_classes]
    params = []
    for i in range(len(dims) - 1):
        key, kw, kb = jax.random.split(key, 3)
        fan_in, fan_out = dims[i], dims[i + 1]
        bound = 1.0 / jnp.sqrt(fan_in)
        w = jax.random.uniform(kw, (fan_in, fan_out), jnp.float32, -bound, bound)
        b = jax.random.uniform(kb, (fan_out,), jnp.float32, -bound, bound)
        params.append((w, b))
    return params


if __name__ == "__main__":
    # Small, module-consistent shapes.
    batch = 8
    in_feats = 32
    n_hidden = 32
    n_classes = 4
    n_layers = 3      # -> Linear(32,32), Linear(32,32), Linear(32,4)
    dropout = 0.5     # identity in eval mode

    key = jax.random.PRNGKey(0)
    key, kx = jax.random.split(key)
    x = jax.random.normal(kx, (batch, in_feats), jnp.float32)

    params = init_params(key, in_feats, n_hidden, n_classes, n_layers)

    out = net_forward(x, params)
    out = jax.block_until_ready(out)

    assert out.shape == (batch, n_classes), out.shape
    assert bool(jnp.all(jnp.isfinite(out))), "non-finite output"
    # Approx (EUP) reciprocal in the sigmoid can overshoot by ~1e-3.
    assert bool(jnp.all((out >= -1e-3) & (out <= 1.0 + 1e-3))), "sigmoid range violated"
    print("KERNEL_OK")
</pallas_src>

<mosaic_0001>
module attributes {stable_mosaic.version = 11 : i64} {
  func.func @_mlp_kernel(%arg0: i32, %arg1: memref<8x128xf32, #tpu.memory_space<vmem>>, %arg2: memref<128x128xf32, #tpu.memory_space<vmem>>, %arg3: memref<1x128xf32, #tpu.memory_space<vmem>>, %arg4: memref<128x128xf32, #tpu.memory_space<vmem>>, %arg5: memref<1x128xf32, #tpu.memory_space<vmem>>, %arg6: memref<128x128xf32, #tpu.memory_space<vmem>>, %arg7: memref<1x128xf32, #tpu.memory_space<vmem>>, %arg8: memref<8x128xf32, #tpu.memory_space<vmem>>, %arg9: memref<8x128xf32, #tpu.memory_space<vmem>>) attributes {dimension_semantics = [#tpu.dimension_semantics<parallel>], iteration_bounds = array<i64: 1>, scalar_prefetch = 0 : i64, scratch_operands = 1 : i64, tpu.core_type = #tpu.core_type<tc>, window_params = [{transform_indices = @transform_0, window_bounds = array<i64: 8, 128>}, {pipeline_mode = #tpu.pipeline_mode<synchronous>, transform_indices = @transform_1, window_bounds = array<i64: 128, 128>}, {pipeline_mode = #tpu.pipeline_mode<synchronous>, transform_indices = @transform_2, window_bounds = array<i64: 1, 128>}, {pipeline_mode = #tpu.pipeline_mode<synchronous>, transform_indices = @transform_3, window_bounds = array<i64: 128, 128>}, {pipeline_mode = #tpu.pipeline_mode<synchronous>, transform_indices = @transform_4, window_bounds = array<i64: 1, 128>}, {pipeline_mode = #tpu.pipeline_mode<synchronous>, transform_indices = @transform_5, window_bounds = array<i64: 128, 128>}, {pipeline_mode = #tpu.pipeline_mode<synchronous>, transform_indices = @transform_6, window_bounds = array<i64: 1, 128>}, {transform_indices = @transform_7, window_bounds = array<i64: 8, 128>}]} {
    %c0 = arith.constant 0 : index
    %c0_0 = arith.constant 0 : index
    %0 = vector.load %arg1[%c0, %c0_0] : memref<8x128xf32, #tpu.memory_space<vmem>>, vector<8x128xf32>
    %c0_1 = arith.constant 0 : index
    %c0_2 = arith.constant 0 : index
    %1 = vector.load %arg2[%c0_1, %c0_2] : memref<128x128xf32, #tpu.memory_space<vmem>>, vector<128x128xf32>
    %cst = arith.constant dense<0.000000e+00> : vector<8x128xf32>
    %2 = tpu.matmul %0, %1, %cst {dimension_numbers = #tpu.dot_dimension_numbers<[1], [0], [0], [1], [0, 0, 1, 1], [], []>} : vector<8x128xf32>, vector<128x128xf32>, vector<8x128xf32> -> vector<8x128xf32>
    %c0_3 = arith.constant 0 : index
    %c0_4 = arith.constant 0 : index
    %3 = vector.load %arg3[%c0_3, %c0_4] : memref<1x128xf32, #tpu.memory_space<vmem>>, vector<1x128xf32>
    %4 = vector.broadcast %3 : vector<1x128xf32> to vector<8x128xf32>
    %5 = arith.addf %2, %4 : vector<8x128xf32>
    %cst_5 = arith.constant 0.000000e+00 : f32
    %6 = vector.broadcast %cst_5 : f32 to vector<8x128xf32>
    %7 = arith.cmpf oge, %5, %6 : vector<8x128xf32>
    %cst_6 = arith.constant 0.00999999977 : f32
    %8 = vector.broadcast %cst_6 : f32 to vector<8x128xf32>
    %9 = arith.mulf %8, %5 : vector<8x128xf32>
    %10 = arith.select %7, %5, %9 : vector<8x128xi1>, vector<8x128xf32>
    %c0_7 = arith.constant 0 : index
    %c0_8 = arith.constant 0 : index
    %11 = vector.load %arg9[%c0_7, %c0_8] : memref<8x128xf32, #tpu.memory_space<vmem>>, vector<8x128xf32>
    tpu.vector_store %arg9[%c0_7, %c0_8], %10 {strides = array<i32>} : memref<8x128xf32, #tpu.memory_space<vmem>>, vector<8x128xf32>,
    %c0_9 = arith.constant 0 : index
    %c0_10 = arith.constant 0 : index
    %12 = vector.load %arg9[%c0_9, %c0_10] : memref<8x128xf32, #tpu.memory_space<vmem>>, vector<8x128xf32>
    %c0_11 = arith.constant 0 : index
    %c0_12 = arith.constant 0 : index
    %13 = vector.load %arg4[%c0_11, %c0_12] : memref<128x128xf32, #tpu.memory_space<vmem>>, vector<128x128xf32>
    %cst_13 = arith.constant dense<0.000000e+00> : vector<8x128xf32>
    %14 = tpu.matmul %12, %13, %cst_13 {dimension_numbers = #tpu.dot_dimension_numbers<[1], [0], [0], [1], [0, 0, 1, 1], [], []>} : vector<8x128xf32>, vector<128x128xf32>, vector<8x128xf32> -> vector<8x128xf32>
    %c0_14 = arith.constant 0 : index
    %c0_15 = arith.constant 0 : index
    %15 = vector.load %arg5[%c0_14, %c0_15] : memref<1x128xf32, #tpu.memory_space<vmem>>, vector<1x128xf32>
    %16 = vector.broadcast %15 : vector<1x128xf32> to vector<8x128xf32>
    %17 = arith.addf %14, %16 : vector<8x128xf32>
    %cst_16 = arith.constant 0.000000e+00 : f32
    %18 = vector.broadcast %cst_16 : f32 to vector<8x128xf32>
    %19 = arith.cmpf oge, %17, %18 : vector<8x128xf32>
    %cst_17 = arith.constant 0.00999999977 : f32
    %20 = vector.broadcast %cst_17 : f32 to vector<8x128xf32>
    %21 = arith.mulf %20, %17 : vector<8x128xf32>
    %22 = arith.select %19, %17, %21 : vector<8x128xi1>, vector<8x128xf32>
    %c0_18 = arith.constant 0 : index
    %c0_19 = arith.constant 0 : index
    %23 = vector.load %arg9[%c0_18, %c0_19] : memref<8x128xf32, #tpu.memory_space<vmem>>, vector<8x128xf32>
    tpu.vector_store %arg9[%c0_18, %c0_19], %22 {strides = array<i32>} : memref<8x128xf32, #tpu.memory_space<vmem>>, vector<8x128xf32>,
    %c0_20 = arith.constant 0 : index
    %c0_21 = arith.constant 0 : index
    %24 = vector.load %arg9[%c0_20, %c0_21] : memref<8x128xf32, #tpu.memory_space<vmem>>, vector<8x128xf32>
    %c0_22 = arith.constant 0 : index
    %c0_23 = arith.constant 0 : index
    %25 = vector.load %arg6[%c0_22, %c0_23] : memref<128x128xf32, #tpu.memory_space<vmem>>, vector<128x128xf32>
    %cst_24 = arith.constant dense<0.000000e+00> : vector<8x128xf32>
    %26 = tpu.matmul %24, %25, %cst_24 {dimension_numbers = #tpu.dot_dimension_numbers<[1], [0], [0], [1], [0, 0, 1, 1], [], []>} : vector<8x128xf32>, vector<128x128xf32>, vector<8x128xf32> -> vector<8x128xf32>
    %c0_25 = arith.constant 0 : index
    %c0_26 = arith.constant 0 : index
    %27 = vector.load %arg7[%c0_25, %c0_26] : memref<1x128xf32, #tpu.memory_space<vmem>>, vector<1x128xf32>
    %28 = vector.broadcast %27 : vector<1x128xf32> to vector<8x128xf32>
    %29 = arith.addf %26, %28 : vector<8x128xf32>
    %cst_27 = arith.constant 0.000000e+00 : f32
    %30 = vector.broadcast %cst_27 : f32 to vector<8x128xf32>
    %31 = arith.subf %30, %29 : vector<8x128xf32>
    %32 = math.exp %31 : vector<8x128xf32>
    %cst_28 = arith.constant 1.000000e+00 : f32
    %33 = vector.broadcast %cst_28 : f32 to vector<8x128xf32>
    %34 = arith.addf %33, %32 : vector<8x128xf32>
    %35 = tpu.reciprocal %34 {approx = true} : vector<8x128xf32> -> vector<8x128xf32>
    %c0_29 = arith.constant 0 : index
    %c0_30 = arith.constant 0 : index
    %36 = vector.load %arg8[%c0_29, %c0_30] : memref<8x128xf32, #tpu.memory_space<vmem>>, vector<8x128xf32>
    tpu.vector_store %arg8[%c0_29, %c0_30], %35 {strides = array<i32>} : memref<8x128xf32, #tpu.memory_space<vmem>>, vector<8x128xf32>,
    return
  }
  func.func @transform_0(%arg0: i32) -> (i32, i32) {
    %c0_i32 = arith.constant 0 : i32
    %c0_i32_0 = arith.constant 0 : i32
    return %arg0, %c0_i32 : i32, i32
  }
  func.func @transform_1(%arg0: i32) -> (i32, i32) {
    %c0_i32 = arith.constant 0 : i32
    %c0_i32_0 = arith.constant 0 : i32
    %c0_i32_1 = arith.constant 0 : i32
    return %c0_i32, %c0_i32_0 : i32, i32
  }
  func.func @transform_2(%arg0: i32) -> (i32, i32) {
    %c0_i32 = arith.constant 0 : i32
    %c0_i32_0 = arith.constant 0 : i32
    %c0_i32_1 = arith.constant 0 : i32
    return %c0_i32, %c0_i32_0 : i32, i32
  }
  func.func @transform_3(%arg0: i32) -> (i32, i32) {
    %c0_i32 = arith.constant 0 : i32
    %c0_i32_0 = arith.constant 0 : i32
    %c0_i32_1 = arith.constant 0 : i32
    return %c0_i32, %c0_i32_0 : i32, i32
  }
  func.func @transform_4(%arg0: i32) -> (i32, i32) {
    %c0_i32 = arith.constant 0 : i32
    %c0_i32_0 = arith.constant 0 : i32
    %c0_i32_1 = arith.constant 0 : i32
    return %c0_i32, %c0_i32_0 : i32, i32
  }
  func.func @transform_5(%arg0: i32) -> (i32, i32) {
    %c0_i32 = arith.constant 0 : i32
    %c0_i32_0 = arith.constant 0 : i32
    %c0_i32_1 = arith.constant 0 : i32
    return %c0_i32, %c0_i32_0 : i32, i32
  }
  func.func @transform_6(%arg0: i32) -> (i32, i32) {
    %c0_i32 = arith.constant 0 : i32
    %c0_i32_0 = arith.constant 0 : i32
    %c0_i32_1 = arith.constant 0 : i32
    return %c0_i32, %c0_i32_0 : i32, i32
  }
  func.func @transform_7(%arg0: i32) -> (i32, i32) {
    %c0_i32 = arith.constant 0 : i32
    %c0_i32_0 = arith.constant 0 : i32
    return %arg0, %c0_i32 : i32, i32
  }
}

</mosaic_0001>

<bundles_post_ra>
// kernel: tpu_custom_call.1
= control target key start
LH: loop header
LB: loop body
LE: loop exit
PB: predicated region body
PF: predicated region fallthrough
CT: control target
= control target key end

     0   :  { %12 = vsyncpa [#allocation4], 0  ;;  %s457_s0 = inlined_call_operand.hbm [shape: f32[8,128], index: 0, kind: input, shape index: {}]   ;;  %s458_s1 = inlined_call_operand.hbm [shape: f32[128,128], index: 1, kind: input, shape index: {}]   ;;  %s459_s2 = inlined_call_operand.vmem [shape: f32[1,128], index: 2, kind: input, shape index: {}]   ;;  %s460_s3 = inlined_call_operand.hbm [shape: f32[128,128], index: 3, kind: input, shape index: {}]   ;;  %s461_s4 = inlined_call_operand.vmem [shape: f32[1,128], index: 4, kind: input, shape index: {}]   ;;  %s462_s5 = inlined_call_operand.hbm [shape: f32[128,128], index: 5, kind: input, shape index: {}]   ;;  %s463_s6 = inlined_call_operand.vmem [shape: f32[1,128], index: 6, kind: input, shape index: {}]   ;;  %s464_s7 = inlined_call_operand.hbm [shape: f32[8,128], index: 7, kind: output, shape index: {}]  }
   0x1   :  { %13 = vsyncpa [#allocation7], 0 }
   0x2   :  { %14 = vsyncpa [#allocation10], 0  ;;  %s31_s26 = sshll.u32 %s458_s1, 4  ;;  %s32_s26 = int_to_ptr.hbm [resolvable:$true] %s31_s26 }
   0x3   :  { %15 = vsyncpa [#allocation5], 0  ;;  %s386_s27 = smov [#allocation6]   ;;  %s21_s8 = sshll.u32 %s457_s0, 4  ;;  %s22_s8 = int_to_ptr.hbm [resolvable:$true] %s21_s8 }
   0x4   :  { %s33_s28 = sshll.u32 %s386_s27, 4  ;;  %s387_s9 = smov 128   ;;  %s34_s28 = int_to_ptr.vmem [resolvable:$true] %s33_s28 }
   0x5   :  { %s388_s10 = smov 8   ;;  %s389_s11 = smov [#allocation3]  }
   0x6   :  { %39 = dma.hbm_to_vmem [thread:$0]  %s32_s26, 2048, %s34_s28, [#allocation7], %s387_s9, %s387_s9, %s388_s10  }
   0x7   :  { %s23_s12 = sshll.u32 %s389_s11, 4  ;;  %s46_s15 = sshll.u32 %s460_s3, 4  ;;  %s24_s12 = int_to_ptr.vmem [resolvable:$true] %s23_s12  ;;  %s47_s15 = int_to_ptr.hbm [resolvable:$true] %s46_s15 }
   0x8   :  { %26 = dma.hbm_to_vmem [thread:$0]  %s22_s8, 128, %s24_s12, [#allocation4]  }
   0x9   :  { %s61_s17 = sshll.u32 %s462_s5, 4  ;;  %s390_s18 = smov [#allocation8]   ;;  %s62_s17 = int_to_ptr.hbm [resolvable:$true] %s61_s17 }
   0xa   :  { %s48_s19 = sshll.u32 %s390_s18, 4  ;;  %s391_s0 = smov [#allocation9]   ;;  %s49_s19 = int_to_ptr.vmem [resolvable:$true] %s48_s19 }
   0xb   :  { %54 = dma.hbm_to_vmem [thread:$0]  %s47_s15, 2048, %s49_s19, [#allocation7], %s387_s9, %s387_s9, %s388_s10  }
   0xc   :  { %s63_s20 = sshll.u32 %s391_s0, 4  ;;  %s64_s20 = int_to_ptr.vmem [resolvable:$true] %s63_s20 }
   0xd   :  { %69 = dma.hbm_to_vmem [thread:$0]  %s62_s17, 2048, %s64_s20, [#allocation10], %s387_s9, %s387_s9, %s388_s10  }
   0xe   :  { %378 = dma.done.wait [#allocation4], 128  }
   0xf   :  { %379 = vsyncadd [#allocation4], 4294967168 }
  0x10   :  { %380 = dma.done.wait [#allocation7], 4096  }
  0x11   :  { %381 = vsyncadd [#allocation7], 4294963200 }
  0x12   :  { %382 = dma.done.wait [#allocation10], 2048  }
  0x13   :  { %383 = vsyncadd [#allocation10], 4294965248  ;;  %v104_v0 = vld [vmem:[#allocation6 + $0x78] sm:$0xff]  ;;  %v103_v1 = vld [vmem:[#allocation6 + $0x70] sm:$0xff]  ;;  %s392_s24 = smov [#allocation11]   ;;  %s232_s27 = sshll.u32 %s464_s7, 4  ;;  %s233_s27 = int_to_ptr.hbm [resolvable:$true] %s232_s27 }
  0x14   :  { %109 = vmatpush.msra.mxu0 %v104_v0  ;;  %v102_v2 = vld [vmem:[#allocation6 + $0x68] sm:$0xff]  ;;  %v101_v3 = vld [vmem:[#allocation6 + $0x60] sm:$0xff]  ;;  %v149_v4 = vld [vmem:[#allocation8 + $0x78] sm:$0xff] }
  0x15   :  { %v100_v5 = vld [vmem:[#allocation6 + $0x58] sm:$0xff]  ;;  %154 = vmatpush.msra.mxu1 %v149_v4  ;;  %v148_v6 = vld [vmem:[#allocation8 + $0x70] sm:$0xff]  ;;  %v147_v7 = vld [vmem:[#allocation8 + $0x68] sm:$0xff] }
  0x16   :  { %110 = vmatpush.msra.mxu0 %v103_v1  ;;  %v99_v8 = vld [vmem:[#allocation6 + $0x50] sm:$0xff]  ;;  %v146_v9 = vld [vmem:[#allocation8 + $0x60] sm:$0xff]  ;;  %v98_v10 = vld [vmem:[#allocation6 + $0x48] sm:$0xff] }
  0x17   :  { %155 = vmatpush.msra.mxu1 %v148_v6  ;;  %v145_v11 = vld [vmem:[#allocation8 + $0x58] sm:$0xff]  ;;  %v97_v12 = vld [vmem:[#allocation6 + $0x40] sm:$0xff]  ;;  %v144_v13 = vld [vmem:[#allocation8 + $0x50] sm:$0xff] }
  0x18   :  { %111 = vmatpush.msra.mxu0 %v102_v2  ;;  %v96_v14 = vld [vmem:[#allocation6 + $0x38] sm:$0xff]  ;;  %v143_v15 = vld [vmem:[#allocation8 + $0x48] sm:$0xff]  ;;  %v95_v16 = vld [vmem:[#allocation6 + $0x30] sm:$0xff] }
  0x19   :  { %156 = vmatpush.msra.mxu1 %v147_v7  ;;  %v142_v17 = vld [vmem:[#allocation8 + $0x40] sm:$0xff]  ;;  %v94_v18 = vld [vmem:[#allocation6 + $0x28] sm:$0xff]  ;;  %v141_v19 = vld [vmem:[#allocation8 + $0x38] sm:$0xff] }
  0x1a   :  { %112 = vmatpush.msra.mxu0 %v101_v3  ;;  %v93_v20 = vld [vmem:[#allocation6 + $0x20] sm:$0xff]  ;;  %v140_v21 = vld [vmem:[#allocation8 + $0x30] sm:$0xff]  ;;  %v92_v22 = vld [vmem:[#allocation6 + $0x18] sm:$0xff] }
  0x1b   :  { %157 = vmatpush.msra.mxu1 %v146_v9  ;;  %v139_v23 = vld [vmem:[#allocation8 + $0x28] sm:$0xff]  ;;  %v91_v24 = vld [vmem:[#allocation6 + $0x10] sm:$0xff]  ;;  %v138_v25 = vld [vmem:[#allocation8 + $0x20] sm:$0xff] }
  0x1c   :  { %113 = vmatpush.msra.mxu0 %v100_v5  ;;  %v90_v26 = vld [vmem:[#allocation6 + $0x8] sm:$0xff]  ;;  %v137_v27 = vld [vmem:[#allocation8 + $0x18] sm:$0xff]  ;;  %v89_v28 = vld [vmem:[#allocation6] sm:$0xff] }
  0x1d   :  { %158 = vmatpush.msra.mxu1 %v145_v11  ;;  %v88_v29 = vld [vmem:[#allocation3] sm:$0xff]  ;;  %v136_v30 = vld [vmem:[#allocation8 + $0x10] sm:$0xff]  ;;  %v135_v31 = vld [vmem:[#allocation8 + $0x8] sm:$0xff] }
  0x1e   :  { %114 = vmatpush.msra.mxu0 %v99_v8  ;;  %v134_v32 = vld [vmem:[#allocation8] sm:$0xff]  ;;  %v194_v33 = vld [vmem:[#allocation9 + $0x78] sm:$0xff]  ;;  %v193_v34 = vld [vmem:[#allocation9 + $0x70] sm:$0xff] }
  0x1f   :  { %159 = vmatpush.msra.mxu1 %v144_v13  ;;  %199 = vmatpush.msra.mxu2 %v194_v33  ;;  %v192_v35 = vld [vmem:[#allocation9 + $0x68] sm:$0xff]  ;;  %v191_v36 = vld [vmem:[#allocation9 + $0x60] sm:$0xff]  ;;  %v190_v37 = vld [vmem:[#allocation9 + $0x58] sm:$0xff] }
  0x20   :  { %115 = vmatpush.msra.mxu0 %v98_v10  ;;  %v189_v38 = vld [vmem:[#allocation9 + $0x50] sm:$0xff]  ;;  %v188_v39 = vld [vmem:[#allocation9 + $0x48] sm:$0xff]  ;;  %v187_v40 = vld [vmem:[#allocation9 + $0x40] sm:$0xff] }
  0x21   :  { %160 = vmatpush.msra.mxu1 %v143_v15  ;;  %200 = vmatpush.msra.mxu2 %v193_v34  ;;  %v186_v41 = vld [vmem:[#allocation9 + $0x38] sm:$0xff]  ;;  %v185_v42 = vld [vmem:[#allocation9 + $0x30] sm:$0xff]  ;;  %v184_v43 = vld [vmem:[#allocation9 + $0x28] sm:$0xff] }
  0x22   :  { %116 = vmatpush.msra.mxu0 %v97_v12  ;;  %v183_v44 = vld [vmem:[#allocation9 + $0x20] sm:$0xff]  ;;  %v182_v45 = vld [vmem:[#allocation9 + $0x18] sm:$0xff]  ;;  %v181_v51 = vld [vmem:[#allocation9 + $0x10] sm:$0xff] }
  0x23   :  { %161 = vmatpush.msra.mxu1 %v142_v17  ;;  %201 = vmatpush.msra.mxu2 %v192_v35  ;;  %v251_v46 = vld [vmem:[%s459_s2] ss:$0 sm:$0xff]  ;;  %v180_v52 = vld [vmem:[#allocation9 + $0x8] sm:$0xff]  ;;  %v179_v53 = vld [vmem:[#allocation9] sm:$0xff] }
  0x24   :  { %117 = vmatpush.msra.mxu0 %v96_v14  ;;  %v252_v54 = vld [vmem:[%s461_s4] ss:$0 sm:$0xff]  ;;  %s230_s4 = sshll.u32 %s392_s24, 4  ;;  %s231_s4 = int_to_ptr.vmem [resolvable:$true] %s230_s4 }
  0x25   :  { %162 = vmatpush.msra.mxu1 %v141_v19  ;;  %202 = vmatpush.msra.mxu2 %v191_v36  ;;  %v253_v59 = vld [vmem:[%s463_s6] ss:$0 sm:$0xff] }
  0x26   :  { %118 = vmatpush.msra.mxu0 %v95_v16 }
  0x27   :  { %163 = vmatpush.msra.mxu1 %v140_v21  ;;  %203 = vmatpush.msra.mxu2 %v190_v37 }
  0x28   :  { %119 = vmatpush.msra.mxu0 %v94_v18 }
  0x29   :  { %164 = vmatpush.msra.mxu1 %v139_v23  ;;  %204 = vmatpush.msra.mxu2 %v189_v38 }
  0x2a   :  { %120 = vmatpush.msra.mxu0 %v93_v20 }
  0x2b   :  { %165 = vmatpush.msra.mxu1 %v138_v25  ;;  %205 = vmatpush.msra.mxu2 %v188_v39 }
  0x2c   :  { %121 = vmatpush.msra.mxu0 %v92_v22 }
  0x2d   :  { %166 = vmatpush.msra.mxu1 %v137_v27  ;;  %206 = vmatpush.msra.mxu2 %v187_v40 }
  0x2e   :  { %122 = vmatpush.msra.mxu0 %v91_v24 }
  0x2f   :  { %167 = vmatpush.msra.mxu1 %v136_v30  ;;  %207 = vmatpush.msra.mxu2 %v186_v41 }
  0x30   :  { %123 = vmatpush.msra.mxu0 %v90_v26 }
  0x31   :  { %168 = vmatpush.msra.mxu1 %v135_v31  ;;  %208 = vmatpush.msra.mxu2 %v185_v42 }
  0x32   :  { %124 = vmatpush.msra.mxu0 %v89_v28 }
  0x33   :  { %125 = vmatmul.f32.vlgmr.msra.gmra.mxu0 %v88_v29  ;;  %169 = vmatpush.msra.mxu1 %v134_v32 }
  0x34   :  { %209 = vmatpush.msra.mxu2 %v184_v43 }
  0x36   :  { %210 = vmatpush.msra.mxu2 %v183_v44 }
  0x38   :  { %211 = vmatpush.msra.mxu2 %v182_v45 }
  0x3a   :  { %212 = vmatpush.msra.mxu2 %v181_v51 }
  0x3c   :  { %213 = vmatpush.msra.mxu2 %v180_v52 }
  0x3e   :  { %214 = vmatpush.msra.mxu2 %v179_v53 }
  0xb0   :  { %v126_v47 = vpop.f32.mrf.mxu0 }
  0xb1   :  { %v127_v48 = vadd.f32 %v251_v46, %v126_v47 }
  0xb3   :  { %vm129_vm0 = vcmp.ge.f32.partialorder %v127_v48, 0.0  ;;  %v130_v49 = vmul.f32 0.01, %v127_v48 }
  0xb5   :  { %v131_v50 = vsel %vm129_vm0, %v127_v48, %v130_v49 }
  0xb6   :  { %170 = vmatmul.f32.vlgmr.msra.gmra.mxu1 %v131_v50 }
 0x133   :  { %v171_v55 = vpop.f32.mrf.mxu1 }
 0x134   :  { %v172_v56 = vadd.f32 %v252_v54, %v171_v55 }
 0x136   :  { %vm174_vm1 = vcmp.ge.f32.partialorder %v172_v56, 0.0  ;;  %v175_v57 = vmul.f32 0.01, %v172_v56 }
 0x138   :  { %v176_v58 = vsel %vm174_vm1, %v172_v56, %v175_v57 }
 0x139   :  { %215 = vmatmul.f32.vlgmr.msra.gmra.mxu2 %v176_v58 }
 0x1bc   :  { %v216_v60 = vpop.f32.mrf.mxu2 }
 0x1bd   :  { %v217_v61 = vadd.f32 %v253_v59, %v216_v60 }
 0x1bf   :  { %v219_v62 = vsub.f32 0.0, %v217_v61 }
 0x1c1   :  { %v220_v63 = vmul.f32 1.442695, %v219_v62 }
 0x1c3   :  { %254 = vpow2.f32 %v220_v63 }
 0x1c9   :  { %v255_v0 = vpop.eup %254 }
 0x1ca   :  { %v222_v1 = vadd.f32 1.0, %v255_v0 }
 0x1cc   :  { %256 = vrcp.f32 %v222_v1 }
 0x1d2   :  { %v257_v2 = vpop.eup %256 }
 0x1d3   :  { %224 = vst [vmem:[#allocation11] sm:$0xff] %v257_v2 }
 0x1d4   :  { %235 = dma.vmem_to_hbm [thread:$0]  %s231_s4, 128, %s233_s27, [#allocation5]  }
 0x1d5   :  { %384 = dma.done.wait [#allocation5], 128  }
 0x1d6   :  { %385 = vsyncadd [#allocation5], 4294967168 }
 0x1d7   :  { %240 = vsyncpa [#allocation4], 1 }
 0x1d8   :  { %241 = vsyncpa [#allocation7], 1 }
 0x1d9   :  { %242 = vsyncpa [#allocation10], 1 }
 0x1da   :  { %243 = vsyncpa [#allocation5], 1 }

</bundles_post_ra>
